<compile_context>
chip_gen: v7x
topology: tpu7x:2x2x1
jax: 0.10.0
libtpu: 0.0.40
codegen_flags: <defaults>
</compile_context>

<pallas_src>
import functools
import math

import jax
import jax.numpy as jnp
from jax.experimental import pallas as pl
from jax.experimental.pallas import tpu as pltpu

D_MODEL = 16
MAX_LEN = 64
DROPOUT_P = 0.1


def make_pe(max_len: int, d_model: int, dtype=jnp.float32):
    """Deterministic sinusoidal positional-encoding buffer (same as __init__)."""
    position = jnp.arange(0.0, max_len, dtype=jnp.float32)[:, None]           # (L, 1)
    div_term = jnp.exp(
        jnp.arange(0.0, d_model, 2, dtype=jnp.float32)
        * -(math.log(10000.0) / d_model)
    )                                                                           # (D/2,)
    pe = jnp.zeros((max_len, d_model), dtype=jnp.float32)
    pe = pe.at[:, 0::2].set(jnp.sin(position * div_term))
    pe = pe.at[:, 1::2].set(jnp.cos(position * div_term))
    return pe.astype(dtype)


def pe_dropout_kernel(x_ref, pe_ref, bits_ref, o_ref, *, threshold, scale):
    """out = dropout(x + pe) on one (tile_rows, tile_cols) lane-dense tile."""
    y = x_ref[...].astype(jnp.float32) + pe_ref[...]            # (tb,tc)+(1,tc)
    keep = bits_ref[...] >= jnp.uint32(threshold)               # P(keep) = 1-p
    o_ref[...] = jnp.where(
        keep, y * jnp.float32(scale), jnp.zeros_like(y)
    ).astype(o_ref.dtype)


def _divisor_tile(dim: int, pref: int, quantum: int) -> int:
    """Largest tile <= pref that divides dim and is a multiple of quantum;
    falls back to the full dim (always a legal block extent)."""
    if dim <= pref or dim % quantum:
        return dim
    t = (pref // quantum) * quantum
    while t >= quantum:
        if dim % t == 0:
            return t
        t -= quantum
    return dim


def positional_encoding_forward(x, pe, key, *, dropout_p=DROPOUT_P,
                                tile_rows=512, tile_cols=2048):
    B, S, D = x.shape
    SD = S * D

    # Replicate torch's broadcast of pe[:B, :S] against (B, S, D): the matrix
    # added to every batch element is broadcast_to(pe[:B, :S], (S, D)).
    pe_row = jnp.broadcast_to(pe[:B, :S], (S, D)).reshape(1, SD).astype(jnp.float32)

    # Lane-dense 2D layout: trailing dim S*D (multiple of 128 for real sizes).
    x2 = x.reshape(B, SD)

    # Dropout randomness generated in the wrapper (see header TODO).
    bits = jax.random.bits(key, (B, SD), dtype=jnp.uint32)

    tb = _divisor_tile(B, tile_rows, 8)
    tc = _divisor_tile(SD, tile_cols, 128)

    threshold = min(int(round(dropout_p * (2.0 ** 32))), 2 ** 32 - 1)
    scale = 1.0 / (1.0 - dropout_p)

    kernel = functools.partial(pe_dropout_kernel, threshold=threshold, scale=scale)

    out2 = pl.pallas_call(
        kernel,
        out_shape=jax.ShapeDtypeStruct((B, SD), x.dtype),
        grid_spec=pl.GridSpec(
            grid=(B // tb, SD // tc),
            in_specs=[
                pl.BlockSpec((tb, tc), lambda i, j: (i, j)),   # x tile
                pl.BlockSpec((1, tc), lambda i, j: (0, j)),    # pe (shared over rows)
                pl.BlockSpec((tb, tc), lambda i, j: (i, j)),   # dropout bits
            ],
            out_specs=pl.BlockSpec((tb, tc), lambda i, j: (i, j)),
        ),
        compiler_params=pltpu.CompilerParams(
            dimension_semantics=("parallel", "parallel"),
        ),
    )(x2, pe_row, bits)

    return out2.reshape(B, S, D)


if __name__ == "__main__":
    # B == S == D required by the original module's broadcasting (see header).
    B, S, D = 16, 16, D_MODEL

    root = jax.random.PRNGKey(0)
    kx, kdrop = jax.random.split(root)
    x = jax.random.normal(kx, (B, S, D), dtype=jnp.float32)
    pe = make_pe(MAX_LEN, D_MODEL)

    out = positional_encoding_forward(x, pe, kdrop)
    out = jax.block_until_ready(out)

    assert out.shape == (B, S, D) and out.dtype == x.dtype

    # Every output element is either dropped (0) or the scaled (x + pe) value.
    pe_add = jnp.broadcast_to(pe[:B, :S], (S, D))[None, :, :]
    expected_kept = (x + pe_add) * (1.0 / (1.0 - DROPOUT_P))
    err = jnp.minimum(jnp.abs(out), jnp.abs(out - expected_kept))
    assert float(jnp.max(err)) < 1e-4, "kernel output mismatch"

    # Keep-rate should be roughly 1 - p.
    keep_frac = float(jnp.mean((out != 0.0).astype(jnp.float32)))
    assert 0.80 < keep_frac < 0.98, f"unexpected dropout keep fraction {keep_frac}"

    print("KERNEL_OK")
</pallas_src>

<mosaic_0001>
module attributes {stable_mosaic.version = 11 : i64} {
  func.func @pe_dropout_kernel(%arg0: i32, %arg1: i32, %arg2: memref<16x256xf32, #tpu.memory_space<vmem>>, %arg3: memref<1x256xf32, #tpu.memory_space<vmem>>, %arg4: memref<16x256xi32, #tpu.memory_space<vmem>>, %arg5: memref<16x256xf32, #tpu.memory_space<vmem>>) attributes {dimension_semantics = [#tpu.dimension_semantics<parallel>, #tpu.dimension_semantics<parallel>], iteration_bounds = array<i64: 1, 1>, scalar_prefetch = 0 : i64, scratch_operands = 0 : i64, tpu.core_type = #tpu.core_type<tc>, window_params = [{transform_indices = @transform_0, window_bounds = array<i64: 16, 256>}, {transform_indices = @transform_1, window_bounds = array<i64: 1, 256>}, {transform_indices = @transform_2, window_bounds = array<i64: 16, 256>}, {transform_indices = @transform_3, window_bounds = array<i64: 16, 256>}]} {
    %c0 = arith.constant 0 : index
    %c0_0 = arith.constant 0 : index
    %0 = vector.load %arg2[%c0, %c0_0] : memref<16x256xf32, #tpu.memory_space<vmem>>, vector<16x256xf32>
    %c0_1 = arith.constant 0 : index
    %c0_2 = arith.constant 0 : index
    %1 = vector.load %arg3[%c0_1, %c0_2] : memref<1x256xf32, #tpu.memory_space<vmem>>, vector<1x256xf32>
    %2 = vector.broadcast %1 : vector<1x256xf32> to vector<16x256xf32>
    %3 = arith.addf %0, %2 : vector<16x256xf32>
    %c0_3 = arith.constant 0 : index
    %c0_4 = arith.constant 0 : index
    %4 = vector.load %arg4[%c0_3, %c0_4] : memref<16x256xi32, #tpu.memory_space<vmem>>, vector<16x256xi32>
    %c429496730_i32 = arith.constant 429496730 : i32
    %5 = vector.broadcast %c429496730_i32 : i32 to vector<16x256xi32>
    %6 = arith.cmpi uge, %4, %5 : vector<16x256xi32>
    %cst = arith.constant 1.11111116 : f32
    %7 = vector.broadcast %cst : f32 to vector<16x256xf32>
    %8 = arith.mulf %3, %7 : vector<16x256xf32>
    %cst_5 = arith.constant 0.000000e+00 : f32
    %9 = vector.broadcast %cst_5 : f32 to vector<16x256xf32>
    %10 = arith.select %6, %8, %9 : vector<16x256xi1>, vector<16x256xf32>
    %c0_6 = arith.constant 0 : index
    %c0_7 = arith.constant 0 : index
    %11 = vector.load %arg5[%c0_6, %c0_7] : memref<16x256xf32, #tpu.memory_space<vmem>>, vector<16x256xf32>
    tpu.vector_store %arg5[%c0_6, %c0_7], %10 {strides = array<i32>} : memref<16x256xf32, #tpu.memory_space<vmem>>, vector<16x256xf32>,
    return
  }
  func.func @transform_0(%arg0: i32, %arg1: i32) -> (i32, i32) {
    %c0_i32 = arith.constant 0 : i32
    return %arg0, %arg1 : i32, i32
  }
  func.func @transform_1(%arg0: i32, %arg1: i32) -> (i32, i32) {
    %c0_i32 = arith.constant 0 : i32
    %c0_i32_0 = arith.constant 0 : i32
    return %c0_i32, %arg1 : i32, i32
  }
  func.func @transform_2(%arg0: i32, %arg1: i32) -> (i32, i32) {
    %c0_i32 = arith.constant 0 : i32
    return %arg0, %arg1 : i32, i32
  }
  func.func @transform_3(%arg0: i32, %arg1: i32) -> (i32, i32) {
    %c0_i32 = arith.constant 0 : i32
    return %arg0, %arg1 : i32, i32
  }
}

</mosaic_0001>

<bundles_post_ra>
// kernel: tpu_custom_call.1
= control target key start
LH: loop header
LB: loop body
LE: loop exit
PB: predicated region body
PF: predicated region fallthrough
CT: control target
= control target key end

     0   :  { %8 = vsyncpa [#allocation3], 0  ;;  %s251_s0 = inlined_call_operand.hbm [shape: f32[16,256], index: 0, kind: input, shape index: {}]   ;;  %s252_s1 = inlined_call_operand.vmem [shape: f32[1,256], index: 1, kind: input, shape index: {}]   ;;  %s253_s2 = inlined_call_operand.hbm [shape: u32[16,256], index: 2, kind: input, shape index: {}]   ;;  %s254_s3 = inlined_call_operand.hbm [shape: f32[16,256], index: 3, kind: output, shape index: {}]  }
   0x1   :  { %9 = vsyncpa [#allocation6], 0 }
   0x2   :  { %10 = vsyncpa [#allocation4], 0  ;;  %s178_s12 = smov [#allocation2]   ;;  %s106_s16 = scalar_lea.hbm %s251_s0, 512 }
   0x3   :  { %s16_s13 = sshll.u32 %s178_s12, 4  ;;  %p107_p0 = scmp.ne.s32.totalorder %s251_s0, %s106_s16  ;;  %s17_s13 = int_to_ptr.vmem [resolvable:$true] %s16_s13 }
   0x4   :  { %p110_p1 = scmp.lt.u32.totalorder %s106_s16, %s251_s0 }
   0x6   :  { %p112_p2 = pnand %p110_p1, %p107_p0 }
   0x8   :  { %115 = shalt.err (!%p112_p2)
}
   0x9   :  { %s116_s21 = scalar_lea.vmem %s17_s13, 512  ;;  %p121_p4 = scmp.lt.s32.totalorder %s17_s13, %s17_s13 }
   0xa   :  { %p117_p3 = scmp.ne.s32.totalorder %s17_s13, %s116_s21  ;;  %p122_p5 = scmp.lt.s32.totalorder %s116_s21, %s116_s21 }
   0xc   :  { %p123_p6 = por %p122_p5, %p121_p4 }
   0xe   :  { %p124_p7 = pnand %p123_p6, %p117_p3 }
  0x10   :  { %127 = shalt.err (!%p124_p7)
}
  0x11   :  { %s179_s22 = smov 256   ;;  %s180_s23 = smov 16  }
  0x12   :  { %22 = dma.hbm_to_vmem [thread:$0]  %s251_s0, 512, %s17_s13, [#allocation3], %s179_s22, %s179_s22, %s180_s23  }
  0x13   :  { %s181_s26 = smov [#allocation5]   ;;  %s128_s30 = scalar_lea.hbm %s253_s2, 512 }
  0x14   :  { %s30_s27 = sshll.u32 %s181_s26, 4  ;;  %p129_p8 = scmp.ne.s32.totalorder %s253_s2, %s128_s30  ;;  %s31_s27 = int_to_ptr.vmem [resolvable:$true] %s30_s27 }
  0x15   :  { %p132_p9 = scmp.lt.u32.totalorder %s128_s30, %s253_s2 }
  0x17   :  { %p134_p10 = pnand %p132_p9, %p129_p8 }
  0x19   :  { %137 = shalt.err (!%p134_p10)
}
  0x1a   :  { %s138_s8 = scalar_lea.vmem %s31_s27, 512  ;;  %p143_p12 = scmp.lt.s32.totalorder %s31_s27, %s31_s27 }
  0x1b   :  { %p139_p11 = scmp.ne.s32.totalorder %s31_s27, %s138_s8  ;;  %p144_p13 = scmp.lt.s32.totalorder %s138_s8, %s138_s8 }
  0x1d   :  { %p145_p0 = por %p144_p13, %p143_p12 }
  0x1f   :  { %p146_p1 = pnand %p145_p0, %p139_p11 }
  0x21   :  { %149 = shalt.err (!%p146_p1)
}
  0x22   :  { %36 = dma.hbm_to_vmem [thread:$0]  %s253_s2, 512, %s31_s27, [#allocation6], %s179_s22, %s179_s22, %s180_s23  }
  0x23   :  { %172 = dma.done.wait [#allocation3], 512  }
  0x24   :  { %173 = vsyncadd [#allocation3], 4294966784 }
  0x25   :  { %174 = dma.done.wait [#allocation6], 512  }
  0x26   :  { %175 = vsyncadd [#allocation6], 4294966784  ;;  %v49_v0 = vlaneseq  ;;  %v43_v4 = vld [vmem:[#allocation2] sm:$0xff]  ;;  %v44_v8 = vld [vmem:[#allocation2 + $0x8] sm:$0xff]  ;;  %s182_s2 = smov [#allocation7]  }
  0x27   :  { %v47_v5 = vld [vmem:[%s252_s1] sm:$0x3]  ;;  %v64_v10 = vld [vmem:[#allocation5 + $0x8] sm:$0xff]  ;;  %v45_v11 = vld [vmem:[#allocation2 + $0x10] sm:$0xff]  ;;  %s88_s12 = sshll.u32 %s182_s2, 4  ;;  %s89_s12 = int_to_ptr.vmem [resolvable:$true] %s88_s12 }
  0x28   :  { %v50_v1 = vshrl.u32 %v49_v0, 7  ;;  %v63_v6 = vld [vmem:[#allocation5] sm:$0xff]  ;;  %v65_v12 = vld [vmem:[#allocation5 + $0x10] sm:$0xff]  ;;  %v46_v13 = vld [vmem:[#allocation2 + $0x18] sm:$0xff]  ;;  %vm68_vm1 = vcmp.ge.u32.totalorder %v64_v10, 429496730  ;;  %p155_p3 = scmp.lt.s32.totalorder %s89_s12, %s89_s12 }
  0x29   :  { %v66_v14 = vld [vmem:[#allocation5 + $0x18] sm:$0xff]  ;;  %vm67_vm0 = vcmp.ge.u32.totalorder %v63_v6, 429496730  ;;  %vm69_vm2 = vcmp.ge.u32.totalorder %v65_v12, 429496730  ;;  %s150_s1 = scalar_lea.vmem %s89_s12, 512 }
  0x2a   :  { %v51_v2 = vsub.s32 0, %v50_v1  ;;  %v55_v3 = vsub.s32 1, %v50_v1  ;;  %vm70_vm3 = vcmp.ge.u32.totalorder %v66_v14, 429496730  ;;  %p151_p2 = scmp.ne.s32.totalorder %s89_s12, %s150_s1  ;;  %p156_p4 = scmp.lt.s32.totalorder %s150_s1, %s150_s1 }
  0x2c   :  { %v52_v7 = vrot.slane %v47_v5, %v51_v2  ;;  %v56_v9 = vrot.slane %v47_v5, %v55_v3  ;;  %p157_p5 = por %p156_p4, %p155_p3 }
  0x2e   :  { %v59_v15 = vadd.f32 %v52_v7, %v43_v4  ;;  %v60_v16 = vadd.f32 %v56_v9, %v44_v8  ;;  %v61_v17 = vadd.f32 %v52_v7, %v45_v11  ;;  %v62_v18 = vadd.f32 %v56_v9, %v46_v13  ;;  %p158_p6 = pnand %p157_p5, %p151_p2 }
  0x30   :  { %v71_v19 = vmul.f32 1.1111112, %v59_v15  ;;  %v72_v20 = vmul.f32 1.1111112, %v60_v16  ;;  %v73_v21 = vmul.f32 1.1111112, %v61_v17 }
  0x31   :  { %v74_v22 = vmul.f32 1.1111112, %v62_v18 }
  0x32   :  { %v75_v23 = vsel %vm67_vm0, %v71_v19, 0.0  ;;  %v76_v24 = vsel %vm68_vm1, %v72_v20, 0.0  ;;  %v77_v25 = vsel %vm69_vm2, %v73_v21, 0.0 }
  0x33   :  { %79 = vst [vmem:[#allocation7] sm:$0xff] %v75_v23  ;;  %80 = vst [vmem:[#allocation7 + $0x8] sm:$0xff] %v76_v24  ;;  %v78_v26 = vsel %vm70_vm3, %v74_v22, 0.0 }
  0x34   :  { %81 = vst [vmem:[#allocation7 + $0x10] sm:$0xff] %v77_v25  ;;  %82 = vst [vmem:[#allocation7 + $0x18] sm:$0xff] %v78_v26 }
  0x35   :  { %161 = shalt.err (!%p158_p6)
}
  0x36   :  { %s162_s15 = scalar_lea.hbm %s254_s3, 512 }
  0x37   :  { %p163_p7 = scmp.ne.s32.totalorder %s254_s3, %s162_s15  ;;  %p166_p8 = scmp.lt.u32.totalorder %s162_s15, %s254_s3 }
  0x39   :  { %p168_p9 = pnand %p166_p8, %p163_p7 }
  0x3b   :  { %171 = shalt.err (!%p168_p9)
}
  0x3c   :  { %94 = dma.vmem_to_hbm [thread:$0]  %s89_s12, 512, %s254_s3, [#allocation4], %s179_s22, %s179_s22, %s180_s23  }
  0x3d   :  { %176 = dma.done.wait [#allocation4], 512  }
  0x3e   :  { %177 = vsyncadd [#allocation4], 4294966784 }
  0x3f   :  { %98 = vsyncpa [#allocation3], 1 }
  0x40   :  { %99 = vsyncpa [#allocation6], 1 }
  0x41   :  { %100 = vsyncpa [#allocation4], 1 }

</bundles_post_ra>
